<compile_context>
chip_gen: v7x
topology: tpu7x:2x2x1
jax: 0.10.0
libtpu: 0.0.40
codegen_flags: <defaults>
</compile_context>

<pallas_src>
import jax
import jax.numpy as jnp
from jax.experimental import pallas as pl
from jax.experimental.pallas import tpu as pltpu


def _round_up(x, m):
    return ((x + m - 1) // m) * m


def qnetwork_kernel(x_ref, w1_ref, b1_ref, w2_ref, b2_ref, w3_ref, b3_ref, out_ref):
    # In-kernel bf16 cast of the x tile (VPU work hidden under the x DMA).
    # All matmuls accumulate in f32 on the MXU; bias add + ReLU stay f32.
    x = x_ref[...].astype(w1_ref.dtype)
    h1 = jnp.dot(x, w1_ref[...], preferred_element_type=jnp.float32)
    h1 = jnp.maximum(h1 + b1_ref[...], 0.0)
    h2 = jnp.dot(h1.astype(w2_ref.dtype), w2_ref[...],
                 preferred_element_type=jnp.float32)
    h2 = jnp.maximum(h2 + b2_ref[...], 0.0)
    h3 = jnp.dot(h2.astype(w3_ref.dtype), w3_ref[...],
                 preferred_element_type=jnp.float32)
    out_ref[...] = (h3 + b3_ref[...]).astype(out_ref.dtype)


def prepare_qnetwork_params(params, dot_dtype=jnp.bfloat16):
    """One-time parameter prep, hoisted out of the forward hot path.

    Weights are stored [in_features, out_features] (transpose of PyTorch's
    [out, in]) so the kernel computes y = x @ W + b directly on the MXU.
    Weights -> bf16 (MXU input dtype), biases -> f32 rows of shape (1, out).
    """
    def bias2d(b):
        b = b.astype(jnp.float32)
        return b.reshape(1, -1) if b.ndim == 1 else b

    return {
        "w1": params["w1"].astype(dot_dtype), "b1": bias2d(params["b1"]),
        "w2": params["w2"].astype(dot_dtype), "b2": bias2d(params["b2"]),
        "w3": params["w3"].astype(dot_dtype), "b3": bias2d(params["b3"]),
    }


def qnetwork_forward(x, prepared, tile_b=1024):
    """x: [B, input_size] float32; prepared: output of prepare_qnetwork_params."""
    w1, b1 = prepared["w1"], prepared["b1"]
    w2, b2 = prepared["w2"], prepared["b2"]
    w3, b3 = prepared["w3"], prepared["b3"]

    B, in_size = x.shape
    out_size = w3.shape[1]

    # Batch tiling: 16-row alignment (bf16 sublane packing). When there is
    # more than one minimal tile of work, force grid >= 2 so the "parallel"
    # batch axis engages both TensorCores on v7x.
    b16 = _round_up(B, 16)
    half = _round_up(pl.cdiv(b16, 2), 16)
    tile = max(16, min(tile_b, half))
    b_padded = _round_up(B, tile)

    xf = x.astype(jnp.float32)
    if b_padded != B:
        xf = jnp.pad(xf, ((0, b_padded - B), (0, 0)))
    grid = (b_padded // tile,)

    # Weights / biases: constant index_map -> VMEM-resident across grid steps.
    # (Their residency cost is ~0.3 MiB; double-buffer waste is negligible.)
    def const(arr):
        nd = arr.ndim
        return pl.BlockSpec(arr.shape, lambda i, _nd=nd: (0,) * _nd)

    out = pl.pallas_call(
        qnetwork_kernel,
        out_shape=jax.ShapeDtypeStruct((b_padded, out_size), jnp.float32),
        grid=grid,
        in_specs=[
            pl.BlockSpec((tile, in_size), lambda i: (i, 0)),   # x tile (pipelined)
            const(w1), const(b1),
            const(w2), const(b2),
            const(w3), const(b3),
        ],
        # Unpadded (tile, out_size) output block: last dim equals the full
        # array extent, so the (8,128) rule is satisfied; masked vst is fine
        # here (store slot is far from saturated) and cuts HBM writeback.
        out_specs=pl.BlockSpec((tile, out_size), lambda i: (i, 0)),
        compiler_params=pltpu.CompilerParams(
            dimension_semantics=("parallel",),
        ),
    )(xf, w1, b1, w2, b2, w3, b3)

    return out[:B] if b_padded != B else out


def init_qnetwork_params(key, input_size, output_size):
    """Deterministic init mimicking PyTorch nn.Linear default (U(+/- 1/sqrt(fan_in)))."""
    def linear_init(k, fan_in, fan_out):
        kw, kb = jax.random.split(k)
        bound = 1.0 / jnp.sqrt(float(fan_in))
        w = jax.random.uniform(kw, (fan_in, fan_out), jnp.float32, -bound, bound)
        b = jax.random.uniform(kb, (1, fan_out), jnp.float32, -bound, bound)
        return w, b

    k1, k2, k3 = jax.random.split(key, 3)
    w1, b1 = linear_init(k1, input_size, 256)
    w2, b2 = linear_init(k2, 256, 128)
    w3, b3 = linear_init(k3, 128, output_size)
    return {"w1": w1, "b1": b1, "w2": w2, "b2": b2, "w3": w3, "b3": b3}


if __name__ == "__main__":
    key = jax.random.PRNGKey(0)
    kx, kp = jax.random.split(key)

    batch = 8
    input_size = 32
    output_size = 8

    x = jax.random.normal(kx, (batch, input_size), jnp.float32)
    params = init_qnetwork_params(kp, input_size, output_size)
    prepared = prepare_qnetwork_params(params)   # one-time prep (cached)

    out = jax.block_until_ready(qnetwork_forward(x, prepared))

    # Reference in plain JAX (same math as the PyTorch forward, f32).
    def ref_fwd(xi):
        h1 = jnp.maximum(xi @ params["w1"] + params["b1"], 0.0)
        h2 = jnp.maximum(h1 @ params["w2"] + params["b2"], 0.0)
        return h2 @ params["w3"] + params["b3"]

    ref = ref_fwd(x)
    assert out.shape == (batch, output_size)
    # bf16 matmul inputs with f32 accumulation -> loosened tolerance vs f32 ref.
    assert jnp.allclose(out, ref, atol=5e-2, rtol=5e-2), (
        f"max abs err = {jnp.max(jnp.abs(out - ref))}")

    # Also exercise the multi-tile (grid >= 2) + batch-padding path.
    x2 = jax.random.normal(jax.random.PRNGKey(1), (40, input_size), jnp.float32)
    out2 = jax.block_until_ready(qnetwork_forward(x2, prepared))
    ref2 = ref_fwd(x2)
    assert out2.shape == (40, output_size)
    assert jnp.allclose(out2, ref2, atol=5e-2, rtol=5e-2), (
        f"max abs err = {jnp.max(jnp.abs(out2 - ref2))}")

    print("KERNEL_OK")
</pallas_src>

<mosaic_0001>
module attributes {stable_mosaic.version = 11 : i64} {
  func.func @qnetwork_kernel(%arg0: i32, %arg1: memref<16x32xf32, #tpu.memory_space<vmem>>, %arg2: memref<32x256xbf16, #tpu.memory_space<vmem>>, %arg3: memref<1x256xf32, #tpu.memory_space<vmem>>, %arg4: memref<256x128xbf16, #tpu.memory_space<vmem>>, %arg5: memref<1x128xf32, #tpu.memory_space<vmem>>, %arg6: memref<128x8xbf16, #tpu.memory_space<vmem>>, %arg7: memref<1x8xf32, #tpu.memory_space<vmem>>, %arg8: memref<16x8xf32, #tpu.memory_space<vmem>>) attributes {dimension_semantics = [#tpu.dimension_semantics<parallel>], iteration_bounds = array<i64: 1>, scalar_prefetch = 0 : i64, scratch_operands = 0 : i64, tpu.core_type = #tpu.core_type<tc>, window_params = [{transform_indices = @transform_0, window_bounds = array<i64: 16, 32>}, {pipeline_mode = #tpu.pipeline_mode<synchronous>, transform_indices = @transform_1, window_bounds = array<i64: 32, 256>}, {pipeline_mode = #tpu.pipeline_mode<synchronous>, transform_indices = @transform_2, window_bounds = array<i64: 1, 256>}, {pipeline_mode = #tpu.pipeline_mode<synchronous>, transform_indices = @transform_3, window_bounds = array<i64: 256, 128>}, {pipeline_mode = #tpu.pipeline_mode<synchronous>, transform_indices = @transform_4, window_bounds = array<i64: 1, 128>}, {pipeline_mode = #tpu.pipeline_mode<synchronous>, transform_indices = @transform_5, window_bounds = array<i64: 128, 8>}, {pipeline_mode = #tpu.pipeline_mode<synchronous>, transform_indices = @transform_6, window_bounds = array<i64: 1, 8>}, {transform_indices = @transform_7, window_bounds = array<i64: 16, 8>}]} {
    %c0 = arith.constant 0 : index
    %c0_0 = arith.constant 0 : index
    %0 = vector.load %arg1[%c0, %c0_0] : memref<16x32xf32, #tpu.memory_space<vmem>>, vector<16x32xf32>
    %1 = arith.truncf %0 : vector<16x32xf32> to vector<16x32xbf16>
    %c0_1 = arith.constant 0 : index
    %c0_2 = arith.constant 0 : index
    %2 = vector.load %arg2[%c0_1, %c0_2] : memref<32x256xbf16, #tpu.memory_space<vmem>>, vector<32x256xbf16>
    %cst = arith.constant dense<0.000000e+00> : vector<16x256xf32>
    %3 = tpu.matmul %1, %2, %cst {dimension_numbers = #tpu.dot_dimension_numbers<[1], [0], [0], [1], [0, 0, 1, 1], [], []>} : vector<16x32xbf16>, vector<32x256xbf16>, vector<16x256xf32> -> vector<16x256xf32>
    %c0_3 = arith.constant 0 : index
    %c0_4 = arith.constant 0 : index
    %4 = vector.load %arg3[%c0_3, %c0_4] : memref<1x256xf32, #tpu.memory_space<vmem>>, vector<1x256xf32>
    %5 = vector.broadcast %4 : vector<1x256xf32> to vector<16x256xf32>
    %6 = arith.addf %3, %5 : vector<16x256xf32>
    %cst_5 = arith.constant 0.000000e+00 : f32
    %7 = vector.broadcast %cst_5 : f32 to vector<16x256xf32>
    %8 = arith.maximumf %6, %7 : vector<16x256xf32>
    %9 = arith.truncf %8 : vector<16x256xf32> to vector<16x256xbf16>
    %c0_6 = arith.constant 0 : index
    %c0_7 = arith.constant 0 : index
    %10 = vector.load %arg4[%c0_6, %c0_7] : memref<256x128xbf16, #tpu.memory_space<vmem>>, vector<256x128xbf16>
    %cst_8 = arith.constant dense<0.000000e+00> : vector<16x128xf32>
    %11 = tpu.matmul %9, %10, %cst_8 {dimension_numbers = #tpu.dot_dimension_numbers<[1], [0], [0], [1], [0, 0, 1, 1], [], []>} : vector<16x256xbf16>, vector<256x128xbf16>, vector<16x128xf32> -> vector<16x128xf32>
    %c0_9 = arith.constant 0 : index
    %c0_10 = arith.constant 0 : index
    %12 = vector.load %arg5[%c0_9, %c0_10] : memref<1x128xf32, #tpu.memory_space<vmem>>, vector<1x128xf32>
    %13 = vector.broadcast %12 : vector<1x128xf32> to vector<16x128xf32>
    %14 = arith.addf %11, %13 : vector<16x128xf32>
    %cst_11 = arith.constant 0.000000e+00 : f32
    %15 = vector.broadcast %cst_11 : f32 to vector<16x128xf32>
    %16 = arith.maximumf %14, %15 : vector<16x128xf32>
    %17 = arith.truncf %16 : vector<16x128xf32> to vector<16x128xbf16>
    %c0_12 = arith.constant 0 : index
    %c0_13 = arith.constant 0 : index
    %18 = vector.load %arg6[%c0_12, %c0_13] : memref<128x8xbf16, #tpu.memory_space<vmem>>, vector<128x8xbf16>
    %cst_14 = arith.constant dense<0.000000e+00> : vector<16x8xf32>
    %19 = tpu.matmul %17, %18, %cst_14 {dimension_numbers = #tpu.dot_dimension_numbers<[1], [0], [0], [1], [0, 0, 1, 1], [], []>} : vector<16x128xbf16>, vector<128x8xbf16>, vector<16x8xf32> -> vector<16x8xf32>
    %c0_15 = arith.constant 0 : index
    %c0_16 = arith.constant 0 : index
    %20 = vector.load %arg7[%c0_15, %c0_16] : memref<1x8xf32, #tpu.memory_space<vmem>>, vector<1x8xf32>
    %21 = vector.broadcast %20 : vector<1x8xf32> to vector<16x8xf32>
    %22 = arith.addf %19, %21 : vector<16x8xf32>
    %c0_17 = arith.constant 0 : index
    %c0_18 = arith.constant 0 : index
    %23 = vector.load %arg8[%c0_17, %c0_18] : memref<16x8xf32, #tpu.memory_space<vmem>>, vector<16x8xf32>
    tpu.vector_store %arg8[%c0_17, %c0_18], %22 {strides = array<i32>} : memref<16x8xf32, #tpu.memory_space<vmem>>, vector<16x8xf32>,
    return
  }
  func.func @transform_0(%arg0: i32) -> (i32, i32) {
    %c0_i32 = arith.constant 0 : i32
    %c0_i32_0 = arith.constant 0 : i32
    return %arg0, %c0_i32 : i32, i32
  }
  func.func @transform_1(%arg0: i32) -> (i32, i32) {
    %c0_i32 = arith.constant 0 : i32
    %c0_i32_0 = arith.constant 0 : i32
    %c0_i32_1 = arith.constant 0 : i32
    return %c0_i32, %c0_i32_0 : i32, i32
  }
  func.func @transform_2(%arg0: i32) -> (i32, i32) {
    %c0_i32 = arith.constant 0 : i32
    %c0_i32_0 = arith.constant 0 : i32
    %c0_i32_1 = arith.constant 0 : i32
    return %c0_i32, %c0_i32_0 : i32, i32
  }
  func.func @transform_3(%arg0: i32) -> (i32, i32) {
    %c0_i32 = arith.constant 0 : i32
    %c0_i32_0 = arith.constant 0 : i32
    %c0_i32_1 = arith.constant 0 : i32
    return %c0_i32, %c0_i32_0 : i32, i32
  }
  func.func @transform_4(%arg0: i32) -> (i32, i32) {
    %c0_i32 = arith.constant 0 : i32
    %c0_i32_0 = arith.constant 0 : i32
    %c0_i32_1 = arith.constant 0 : i32
    return %c0_i32, %c0_i32_0 : i32, i32
  }
  func.func @transform_5(%arg0: i32) -> (i32, i32) {
    %c0_i32 = arith.constant 0 : i32
    %c0_i32_0 = arith.constant 0 : i32
    %c0_i32_1 = arith.constant 0 : i32
    return %c0_i32, %c0_i32_0 : i32, i32
  }
  func.func @transform_6(%arg0: i32) -> (i32, i32) {
    %c0_i32 = arith.constant 0 : i32
    %c0_i32_0 = arith.constant 0 : i32
    %c0_i32_1 = arith.constant 0 : i32
    return %c0_i32, %c0_i32_0 : i32, i32
  }
  func.func @transform_7(%arg0: i32) -> (i32, i32) {
    %c0_i32 = arith.constant 0 : i32
    %c0_i32_0 = arith.constant 0 : i32
    return %arg0, %c0_i32 : i32, i32
  }
}

</mosaic_0001>

<bundles_post_ra>
// kernel: tpu_custom_call.1
= control target key start
LH: loop header
LB: loop body
LE: loop exit
PB: predicated region body
PF: predicated region fallthrough
CT: control target
= control target key end

     0   :  { %12 = vsyncpa [#allocation3], 0  ;;  %s574_s24 = smov [#allocation2]   ;;  %s689_s0 = inlined_call_operand.vmem [shape: f32[16,32], index: 0, kind: input, shape index: {}]   ;;  %s690_s1 = inlined_call_operand.vmem [shape: bf16[32,256], index: 1, kind: input, shape index: {}]   ;;  %s691_s2 = inlined_call_operand.vmem [shape: f32[1,256], index: 2, kind: input, shape index: {}]   ;;  %s692_s3 = inlined_call_operand.hbm [shape: bf16[256,128], index: 3, kind: input, shape index: {}]   ;;  %s693_s4 = inlined_call_operand.vmem [shape: f32[1,128], index: 4, kind: input, shape index: {}]   ;;  %s694_s5 = inlined_call_operand.vmem [shape: bf16[128,8], index: 5, kind: input, shape index: {}]   ;;  %s695_s6 = inlined_call_operand.vmem [shape: f32[1,8], index: 6, kind: input, shape index: {}]   ;;  %s696_s7 = inlined_call_operand.vmem [shape: f32[16,8], index: 7, kind: output, shape index: {}]  }
   0x1   :  { %s24_s25 = sshll.u32 %s574_s24, 4  ;;  %s550_s28 = scalar_lea.hbm %s692_s3, 2048  ;;  %s25_s25 = int_to_ptr.vmem [resolvable:$true] %s24_s25 }
   0x2   :  { %p551_p0 = scmp.ne.s32.totalorder %s692_s3, %s550_s28  ;;  %p554_p1 = scmp.lt.u32.totalorder %s550_s28, %s692_s3 }
   0x4   :  { %p556_p2 = pnand %p554_p1, %p551_p0 }
   0x6   :  { %559 = shalt.err (!%p556_p2)
}
   0x7   :  { %s560_s10 = scalar_lea.vmem %s25_s25, 2048  ;;  %p565_p4 = scmp.lt.s32.totalorder %s25_s25, %s25_s25 }
   0x8   :  { %p561_p3 = scmp.ne.s32.totalorder %s25_s25, %s560_s10  ;;  %p566_p5 = scmp.lt.s32.totalorder %s560_s10, %s560_s10 }
   0xa   :  { %p567_p6 = por %p566_p5, %p565_p4 }
   0xc   :  { %p568_p7 = pnand %p567_p6, %p561_p3 }
   0xe   :  { %571 = shalt.err (!%p568_p7)
}
   0xf   :  { %s575_s11 = smov 64   ;;  %s576_s12 = smov 4  }
  0x10   :  { %30 = dma.hbm_to_vmem [thread:$0]  %s692_s3, 2048, %s25_s25, [#allocation3], %s575_s11, %s575_s11, %s576_s12  }
  0x11   :  { %572 = dma.done.wait [#allocation3], 2048  }
  0x12   :  { %573 = vsyncadd [#allocation3], 4294965248  ;;  %v577_v0 = vmov 0   ;;  %v520_v1 = vld [vmem:[%s690_s1 + $0x4] ss:$8 sps:$4 sm:$0xff]   ;;  %vm80_vm0 = vcmask 261120   ;;  %v50_v30 = vlaneseq }
  0x13   :  { %116 = vmatprep.mubr.bf16.mxu0 %v577_v0  ;;  %v522_v2 = vld [vmem:[%s690_s1] ss:$8 sps:$4 sm:$0xff]   ;;  %84 = vmatprep.subr.bf16.mxu0 %v520_v1  ;;  %v523_v3 = vld [vmem:[%s690_s1 + $0x14] ss:$8 sps:$4 sm:$0xff]   ;;  %v525_v4 = vld [vmem:[%s690_s1 + $0x10] ss:$8 sps:$4 sm:$0xff]  }
  0x14   :  { %v41_v5 = vld [vmem:[%s689_s0] sm:$0xff]  ;;  %85 = vmatpush1.bf16.msra.mxu0 %v522_v2  ;;  %v42_v6 = vld [vmem:[%s689_s0 + $0x8] sm:$0xff]  ;;  %v530_v12 = vld [vmem:[#allocation2 + $0x50] sm:$0xff]   ;;  %v578_v25 = vmov 0.0   ;;  %v51_v31 = vshrl.u32 %v50_v30, 7  ;;  %vm579_vm1 = vmmov 0  }
  0x15   :  { %86 = vmatprep.subr.bf16.mxu0 %v523_v3  ;;  %v526_v7 = vld [vmem:[#allocation2 + $0x40] sm:$0xff]   ;;  %v43_v9 = vpack.c.bf16 %v42_v6, %v41_v5  ;;  %v528_v10 = vld [vmem:[#allocation2 + $0x48] sm:$0xff]   ;;  %v531_v13 = vld [vmem:[#allocation2 + $0x10] sm:$0xff]   ;;  %vm424_vm2 = vcmask 64512  }
  0x16   :  { %v527_v8 = vld [vmem:[#allocation2] sm:$0xff]   ;;  %463 = vmatprep.subr.bf16.mxu1 %v526_v7  ;;  %v529_v11 = vld [vmem:[#allocation2 + $0x8] sm:$0xff]   ;;  %v532_v14 = vld [vmem:[#allocation2 + $0x58] sm:$0xff]   ;;  %v52_v32 = vsub.s32 0, %v51_v31  ;;  %v56_v34 = vsub.s32 1, %v51_v31 }
  0x17   :  { %464 = vmatpush3.bf16.msra.mxu1 %v527_v8  ;;  %v533_v15 = vld [vmem:[#allocation2 + $0x18] sm:$0xff]   ;;  %v534_v16 = vld [vmem:[#allocation2 + $0x60] sm:$0xff]   ;;  %v536_v18 = vld [vmem:[#allocation2 + $0x68] sm:$0xff]  }
  0x18   :  { %87 = vmatpush1.bf16.msra.mxu0 %v525_v4  ;;  %465 = vmatprep.subr.bf16.mxu1 %v528_v10  ;;  %v535_v17 = vld [vmem:[#allocation2 + $0x20] sm:$0xff]   ;;  %v537_v19 = vld [vmem:[#allocation2 + $0x28] sm:$0xff]   ;;  %v538_v20 = vld [vmem:[#allocation2 + $0x70] sm:$0xff]  }
  0x19   :  { %v539_v21 = vld [vmem:[#allocation2 + $0x30] sm:$0xff]   ;;  %v540_v22 = vld [vmem:[#allocation2 + $0x78] sm:$0xff]   ;;  %v542_v24 = vld [vmem:[%s694_s5] sm:$0xff]   ;;  %494 = vmatprep.subr.bf16.mxu0 %v578_v25 }
  0x1a   :  { %v541_v23 = vld [vmem:[#allocation2 + $0x38] sm:$0xff]   ;;  %v543_v26 = vld [vmem:[%s694_s5 + $0x8] sm:$0xff]   ;;  %v544_v27 = vld [vmem:[%s694_s5 + $0x10] sm:$0xff]  }
  0x1b   :  { %436 = vmatmul.mubr.msk.bf16.vlgmr.msra.gmra.mrb[0].mxu0 %vm80_vm0, %v43_v9  ;;  %466 = vmatpush3.bf16.msra.mxu1 %v529_v11  ;;  %v545_v28 = vld [vmem:[%s694_s5 + $0x18] sm:$0xff]   ;;  %v546_v29 = vld [vmem:[%s694_s5 + $0x20] sm:$0xff]   ;;  %v547_v51 = vld [vmem:[%s694_s5 + $0x28] sm:$0xff]  }
  0x1c   :  { %467 = vmatprep.subr.bf16.mxu1 %v530_v12  ;;  %495 = vmatpush3.bf16.msra.mxu0 %v542_v24  ;;  %v48_v33 = vld [vmem:[%s691_s2] sm:$0x3]  ;;  %v548_v52 = vld [vmem:[%s694_s5 + $0x30] sm:$0xff]   ;;  %v549_v53 = vld [vmem:[%s694_s5 + $0x38] sm:$0xff]  }
  0x1d   :  { %496 = vmatprep.subr.bf16.mxu0 %v578_v25  ;;  %v53_v35 = vrot.slane %v48_v33, %v52_v32  ;;  %v57_v36 = vrot.slane %v48_v33, %v56_v34  ;;  %510 = vmatprep.mubr.msk.bf16.mxu0 %vm579_vm1, %v578_v25  ;;  %v437_v55 = vld [vmem:[%s693_s4] ss:$0 sm:$0xff] }
  0x1e   :  { %v454_v2 = vld [vmem:[%s695_s6] ss:$0 sm:$0xff] }
  0x1f   :  { %468 = vmatpush3.bf16.msra.mxu1 %v531_v13 }
  0x20   :  { %469 = vmatprep.subr.bf16.mxu1 %v532_v14  ;;  %497 = vmatpush3.bf16.msra.mxu0 %v543_v26 }
  0x21   :  { %498 = vmatprep.subr.bf16.mxu0 %v578_v25 }
  0x23   :  { %470 = vmatpush3.bf16.msra.mxu1 %v533_v15 }
  0x24   :  { %471 = vmatprep.subr.bf16.mxu1 %v534_v16  ;;  %499 = vmatpush3.bf16.msra.mxu0 %v544_v27 }
  0x25   :  { %500 = vmatprep.subr.bf16.mxu0 %v578_v25 }
  0x27   :  { %472 = vmatpush3.bf16.msra.mxu1 %v535_v17 }
  0x28   :  { %473 = vmatprep.subr.bf16.mxu1 %v536_v18  ;;  %501 = vmatpush3.bf16.msra.mxu0 %v545_v28 }
  0x29   :  { %502 = vmatprep.subr.bf16.mxu0 %v578_v25 }
  0x2b   :  { %474 = vmatpush3.bf16.msra.mxu1 %v537_v19 }
  0x2c   :  { %475 = vmatprep.subr.bf16.mxu1 %v538_v20  ;;  %503 = vmatpush3.bf16.msra.mxu0 %v546_v29 }
  0x2d   :  { %504 = vmatprep.subr.bf16.mxu0 %v578_v25 }
  0x2f   :  { %476 = vmatpush3.bf16.msra.mxu1 %v539_v21 }
  0x30   :  { %477 = vmatprep.subr.bf16.mxu1 %v540_v22  ;;  %505 = vmatpush3.bf16.msra.mxu0 %v547_v51 }
  0x31   :  { %506 = vmatprep.subr.bf16.mxu0 %v578_v25 }
  0x33   :  { %478 = vmatpush3.bf16.msra.mxu1 %v541_v23 }
  0x34   :  { %507 = vmatpush3.bf16.msra.mxu0 %v548_v52 }
  0x35   :  { %508 = vmatprep.subr.bf16.mxu0 %v578_v25 }
  0x38   :  { %509 = vmatpush3.bf16.msra.mxu0 %v549_v53 }
  0xee   :  { %v118_v37 = vpop.f32.mrb[0].mxu0 }
  0xef   :  { %v119_v38 = vadd.f32 %v118_v37, %v53_v35  ;;  %v120_v39 = vpop.f32.mrb[1].mxu0 }
  0xf0   :  { %v121_v40 = vadd.f32 %v120_v39, %v57_v36  ;;  %v122_v41 = vpop.f32.mrb[2].mxu0 }
  0xf1   :  { %v123_v42 = vadd.f32 %v122_v41, %v53_v35  ;;  %v124_v43 = vpop.f32.mrb[3].mxu0  ;;  %v127_v45 = vmax.f32 %v119_v38, 0.0 }
  0xf2   :  { %v125_v44 = vadd.f32 %v124_v43, %v57_v36  ;;  %v128_v47 = vmax.f32 %v121_v40, 0.0 }
  0xf3   :  { %v129_v46 = vmax.f32 %v123_v42, 0.0 }
  0xf4   :  { %v130_v48 = vmax.f32 %v125_v44, 0.0 }
  0xf5   :  { %v131_v49 = vpack.c.bf16 %v129_v46, %v127_v45 }
  0xf6   :  { %v132_v50 = vpack.c.bf16 %v130_v48, %v128_v47 }
  0xf8   :  { %300 = vmatprep.mubr.bf16.mxu1 %v132_v50 }
  0xf9   :  { %301 = vmatmul.mubr.bf16.vlgmr.msra.gmra.mrb[0].mxu1 %v131_v49 }
 0x1cc   :  { %v479_v54 = vpop.f32.mrb[0].mxu1 }
 0x1cd   :  { %v480_v56 = vpop.f32.mrb[1].mxu1 }
 0x1ce   :  { %v481_v57 = vadd.f32 %v480_v56, %v479_v54  ;;  %v482_v58 = vpop.f32.mrb[2].mxu1 }
 0x1cf   :  { %v483_v59 = vpop.f32.mrb[3].mxu1 }
 0x1d0   :  { %v303_v60 = vadd.f32 %v481_v57, %v437_v55  ;;  %v484_v61 = vadd.f32 %v483_v59, %v482_v58 }
 0x1d2   :  { %v306_v62 = vadd.f32 %v484_v61, %v437_v55  ;;  %v309_v63 = vmax.f32 %v303_v60, 0.0 }
 0x1d4   :  { %v310_v0 = vmax.f32 %v306_v62, 0.0 }
 0x1d6   :  { %v311_v1 = vpack.c.bf16 %v310_v0, %v309_v63 }
 0x1d8   :  { %511 = vmatmul.mubr.bf16.vlgmr.msra.gmra.mrb[4].mxu0 %v311_v1 }
 0x2ab   :  { %v417_v3 = vpop.f32.mrb[4].mxu0 }
 0x2ac   :  { %v418_v4 = vadd.f32 %v454_v2, %v417_v3  ;;  %v512_v5 = vpop.f32.mrb[5].mxu0 }
 0x2ad   :  { %v420_v6 = vpop.f32.mrb[6].mxu0 }
 0x2ae   :  { %425 = vst.msk [vmem:[%s696_s7] sm:$0xff] %vm424_vm2, %v418_v4  ;;  %v421_v7 = vadd.f32 %v454_v2, %v420_v6  ;;  %v513_v8 = vpop.f32.mrb[7].mxu0 }
 0x2b0   :  { %426 = vst.msk [vmem:[%s696_s7 + $0x8] sm:$0xff] %vm424_vm2, %v421_v7 }
 0x2b1   :  { %431 = vsyncpa [#allocation3], 1 }

</bundles_post_ra>
